<compile_context>
chip_gen: v7x
topology: tpu7x:2x2x1
jax: 0.10.0
libtpu: 0.0.40
codegen_flags: <defaults>
</compile_context>

<pallas_src>
import functools
import math

import jax
import jax.numpy as jnp
from jax.experimental import pallas as pl
from jax.experimental.pallas import tpu as pltpu


def _drug_fused_kernel(*refs, cfgs):
    """Fused Conv1d+bias+ReLU+MaxPool1d stack for one batch element.

    refs = [x_ref,                      (C_in, L_in)      channels-on-sublanes
            w_0, b_0, ..., w_{n-1}, b_{n-1},
                                        w_i: (K, C_out, C_in), b_i: (C_out, 1)
            o_ref,                      (C_last, L_last)
            scratch_0, ..., scratch_{n-2}]   VMEM inter-layer activations
    cfgs = ((ksize, pool, l_out, l_pool), ...)  static per-layer geometry
    """
    n = len(cfgs)
    x_ref = refs[0]
    wb_refs = refs[1:1 + 2 * n]
    o_ref = refs[1 + 2 * n]
    scratch = refs[2 + 2 * n:]

    src = x_ref                                    # current layer input (C, L)
    for i, (ksize, pool, l_out, l_pool) in enumerate(cfgs):
        w_ref = wb_refs[2 * i]                     # (K, C_out, C_in)
        b_ref = wb_refs[2 * i + 1]                 # (C_out, 1)

        # Conv1d(valid, stride=1) as K shifted matmuls in (C_out, L) layout:
        #   out[co, l] = sum_k sum_ci w[k, co, ci] * src[ci, l + k]
        # First dot initializes the accumulator (no zeros init needed).
        acc = jnp.dot(w_ref[0], src[:, 0:l_out],
                      preferred_element_type=jnp.float32)
        for k in range(1, ksize):
            acc = acc + jnp.dot(w_ref[k], src[:, k:k + l_out],
                                preferred_element_type=jnp.float32)
        acc = jnp.maximum(acc + b_ref[...], 0.0)   # bias + ReLU, (C_out, l_out)

        # MaxPool1d(kernel=stride=pool), floor semantics, along the lane axis:
        # 1) windowed max over `pool` consecutive lanes (shifted slices, VPU)
        l_wm = l_out - pool + 1
        wm = acc[:, 0:l_wm]
        for s in range(1, pool):
            wm = jnp.maximum(wm, acc[:, s:s + l_wm])
        # 2) compact lanes {0, pool, 2*pool, ...} with an exact 0/1 selection
        #    matmul (HIGHEST precision) -> lane-dense (C_out, l_pool) result.
        if pool == 1:
            pooled = wm
        else:
            rows = jax.lax.broadcasted_iota(jnp.int32, (l_wm, l_pool), 0)
            cols = jax.lax.broadcasted_iota(jnp.int32, (l_wm, l_pool), 1)
            sel = (rows == cols * pool).astype(jnp.float32)
            pooled = jnp.dot(wm, sel,
                             precision=jax.lax.Precision.HIGHEST,
                             preferred_element_type=jnp.float32)

        if i + 1 < n:
            scratch[i][...] = pooled               # stays resident in VMEM
            src = scratch[i]
        else:
            o_ref[...] = pooled.astype(o_ref.dtype)    # single full-block store


def _drug_forward(x_ncl, kernel_params, cfgs, out_c, out_l, inter_shapes):
    """x_ncl: (B, C_in, L_in) NCL.  Returns (B, out_c * out_l) flattened features."""
    B, C_in, L_in = x_ncl.shape
    kernel = functools.partial(_drug_fused_kernel, cfgs=tuple(cfgs))

    in_specs = [pl.BlockSpec((None, C_in, L_in), lambda b: (b, 0, 0))]
    operands = [x_ncl]
    for w_kio, b_col in kernel_params:
        in_specs.append(pl.BlockSpec(w_kio.shape, lambda b: (0, 0, 0)))
        in_specs.append(pl.BlockSpec(b_col.shape, lambda b: (0, 0)))
        operands += [w_kio, b_col]

    out = pl.pallas_call(
        kernel,
        out_shape=jax.ShapeDtypeStruct((B, out_c, out_l), x_ncl.dtype),
        grid=(B,),
        in_specs=in_specs,
        out_specs=pl.BlockSpec((None, out_c, out_l), lambda b: (b, 0, 0)),
        scratch_shapes=[pltpu.VMEM(s, jnp.float32) for s in inter_shapes],
        compiler_params=pltpu.CompilerParams(
            dimension_semantics=("parallel",)),   # v7x: 2 TCs split the batch
    )(*operands)
    # PyTorch: x.view(-1, C*L) on the contiguous NCL tensor — free reshape.
    return out.reshape(B, out_c * out_l)


class DrugPallas:
    """Pallas equivalent of models/tcnns.py::Drug (synthetic deterministic weights)."""

    def __init__(self, input_drug_feature_dim, input_drug_feature_channel,
                 layer_hyperparameter, layer_num, key):
        assert len(layer_hyperparameter['cnn_channels']) == layer_num
        self.input_drug_feature_channel = input_drug_feature_channel
        self.params = []          # original (C_out, C_in, K) weights, for the reference
        self.kernel_params = []   # precomputed (K, C_out, C_in) weights + (C_out, 1) bias
        in_ch = input_drug_feature_channel
        dim = input_drug_feature_dim
        for i, out_ch in enumerate(layer_hyperparameter['cnn_channels']):
            k = layer_hyperparameter['kernel_size'][i]
            pool = layer_hyperparameter['maxpool1d'][i]
            key, kw, kb = jax.random.split(key, 3)
            bound = 1.0 / math.sqrt(in_ch * k)            # PyTorch Conv1d default init
            w = jax.random.uniform(kw, (out_ch, in_ch, k), jnp.float32, -bound, bound)
            b = jax.random.uniform(kb, (out_ch,), jnp.float32, -bound, bound)
            self.params.append((w, b, pool))
            # Hoisted once: tap-major weights + column bias for the kernel layout.
            self.kernel_params.append((jnp.transpose(w, (2, 0, 1)), b.reshape(-1, 1)))
            in_ch = out_ch
            dim = int((dim - k + 1) / pool)
        self.drug_output_feature_channel = in_ch
        self.drug_output_feature_dim = dim

    def __call__(self, x_ncl):
        # x_ncl: (B, C, L) — same layout PyTorch's backbone consumes.
        B, C, L = x_ncl.shape
        if C != self.input_drug_feature_channel:
            # Matches torch.cat((zeros, x), dim=1): missing channels PREPENDED.
            pad = jnp.zeros((B, self.input_drug_feature_channel - C, L), x_ncl.dtype)
            x_ncl = jnp.concatenate([pad, x_ncl], axis=1)

        # Static per-layer geometry derived from the actual input length.
        cfgs, inter_shapes = [], []
        l_cur = x_ncl.shape[2]
        for li, (w, b, pool) in enumerate(self.params):
            ksize = w.shape[2]
            c_out = w.shape[0]
            l_out = l_cur - ksize + 1
            l_pool = l_out // pool
            cfgs.append((ksize, pool, l_out, l_pool))
            if li + 1 < len(self.params):
                inter_shapes.append((c_out, l_pool))
            l_cur = l_pool

        out_c = self.drug_output_feature_channel
        out_l = l_cur
        return _drug_forward(x_ncl, self.kernel_params, cfgs, out_c, out_l,
                             inter_shapes)


def ref_forward(x_ncl, params):
    """Pure-JAX reference matching the PyTorch backbone."""
    x = x_ncl
    for w, b, pool in params:
        x = jax.lax.conv_general_dilated(
            x, w, window_strides=(1,), padding='VALID',
            dimension_numbers=('NCH', 'OIH', 'NCH'))
        x = x + b[None, :, None]
        x = jnp.maximum(x, 0.0)
        B, C, L = x.shape
        Lp = L // pool
        x = x[:, :, :Lp * pool].reshape(B, C, Lp, pool).max(axis=-1)
    return x.reshape(x.shape[0], -1)


if __name__ == "__main__":
    key = jax.random.PRNGKey(0)
    key, kx, kp = jax.random.split(key, 3)

    B = 2
    input_drug_feature_dim = 64        # sequence length L
    input_drug_feature_channel = 4     # one-hot channels C
    layer_hyperparameter = {
        'cnn_channels': [8, 16, 16],
        'kernel_size': [3, 3, 3],
        'maxpool1d':   [2, 2, 2],
    }
    layer_num = 3

    model = DrugPallas(input_drug_feature_dim, input_drug_feature_channel,
                       layer_hyperparameter, layer_num, kp)

    # Stand-in for the stacked tCNNs drug matrices: (B, C, L) float32.
    x = jax.random.uniform(kx, (B, input_drug_feature_channel,
                                input_drug_feature_dim), jnp.float32)

    out = model(x)
    out = jax.block_until_ready(out)

    expected_feat = model.drug_output_feature_channel * model.drug_output_feature_dim
    assert out.shape == (B, expected_feat), (out.shape, expected_feat)

    ref = jax.block_until_ready(ref_forward(x, model.params))
    assert jnp.allclose(out, ref, atol=1e-4, rtol=1e-4), \
        float(jnp.max(jnp.abs(out - ref)))

    print("KERNEL_OK")
</pallas_src>

<mosaic_0001>
module attributes {stable_mosaic.version = 11 : i64} {
  func.func @_drug_fused_kernel(%arg0: i32, %arg1: memref<1x4x64xf32, #tpu.memory_space<vmem>>, %arg2: memref<3x8x4xf32, #tpu.memory_space<vmem>>, %arg3: memref<8x1xf32, #tpu.memory_space<vmem>>, %arg4: memref<3x16x8xf32, #tpu.memory_space<vmem>>, %arg5: memref<16x1xf32, #tpu.memory_space<vmem>>, %arg6: memref<3x16x16xf32, #tpu.memory_space<vmem>>, %arg7: memref<16x1xf32, #tpu.memory_space<vmem>>, %arg8: memref<1x16x6xf32, #tpu.memory_space<vmem>>, %arg9: memref<8x31xf32, #tpu.memory_space<vmem>>, %arg10: memref<16x14xf32, #tpu.memory_space<vmem>>) attributes {dimension_semantics = [#tpu.dimension_semantics<parallel>], iteration_bounds = array<i64: 2>, scalar_prefetch = 0 : i64, scratch_operands = 2 : i64, tpu.core_type = #tpu.core_type<tc>, window_params = [{transform_indices = @transform_0, window_bounds = array<i64: 1, 4, 64>}, {pipeline_mode = #tpu.pipeline_mode<synchronous>, transform_indices = @transform_1, window_bounds = array<i64: 3, 8, 4>}, {pipeline_mode = #tpu.pipeline_mode<synchronous>, transform_indices = @transform_2, window_bounds = array<i64: 8, 1>}, {pipeline_mode = #tpu.pipeline_mode<synchronous>, transform_indices = @transform_3, window_bounds = array<i64: 3, 16, 8>}, {pipeline_mode = #tpu.pipeline_mode<synchronous>, transform_indices = @transform_4, window_bounds = array<i64: 16, 1>}, {pipeline_mode = #tpu.pipeline_mode<synchronous>, transform_indices = @transform_5, window_bounds = array<i64: 3, 16, 16>}, {pipeline_mode = #tpu.pipeline_mode<synchronous>, transform_indices = @transform_6, window_bounds = array<i64: 16, 1>}, {transform_indices = @transform_7, window_bounds = array<i64: 1, 16, 6>}]} {
    %c0 = arith.constant 0 : index
    %c0_0 = arith.constant 0 : index
    %c0_1 = arith.constant 0 : index
    %0 = vector.load %arg2[%c0, %c0_0, %c0_1] : memref<3x8x4xf32, #tpu.memory_space<vmem>>, vector<1x8x4xf32>
    %1 = vector.shape_cast %0 : vector<1x8x4xf32> to vector<8x4xf32>
    %c0_2 = arith.constant 0 : index
    %c0_3 = arith.constant 0 : index
    %c0_4 = arith.constant 0 : index
    %2 = vector.load %arg1[%c0_2, %c0_3, %c0_4] : memref<1x4x64xf32, #tpu.memory_space<vmem>>, vector<1x4x62xf32>
    %3 = vector.shape_cast %2 : vector<1x4x62xf32> to vector<4x62xf32>
    %cst = arith.constant dense<0.000000e+00> : vector<8x62xf32>
    %4 = tpu.matmul %1, %3, %cst {dimension_numbers = #tpu.dot_dimension_numbers<[1], [0], [0], [1], [0, 0, 1, 1], [], []>} : vector<8x4xf32>, vector<4x62xf32>, vector<8x62xf32> -> vector<8x62xf32>
    %c1 = arith.constant 1 : index
    %c0_5 = arith.constant 0 : index
    %c0_6 = arith.constant 0 : index
    %5 = vector.load %arg2[%c1, %c0_5, %c0_6] : memref<3x8x4xf32, #tpu.memory_space<vmem>>, vector<1x8x4xf32>
    %6 = vector.shape_cast %5 : vector<1x8x4xf32> to vector<8x4xf32>
    %c0_7 = arith.constant 0 : index
    %c0_8 = arith.constant 0 : index
    %c1_9 = arith.constant 1 : index
    %7 = vector.load %arg1[%c0_7, %c0_8, %c1_9] : memref<1x4x64xf32, #tpu.memory_space<vmem>>, vector<1x4x62xf32>
    %8 = vector.shape_cast %7 : vector<1x4x62xf32> to vector<4x62xf32>
    %cst_10 = arith.constant dense<0.000000e+00> : vector<8x62xf32>
    %9 = tpu.matmul %6, %8, %cst_10 {dimension_numbers = #tpu.dot_dimension_numbers<[1], [0], [0], [1], [0, 0, 1, 1], [], []>} : vector<8x4xf32>, vector<4x62xf32>, vector<8x62xf32> -> vector<8x62xf32>
    %10 = arith.addf %4, %9 : vector<8x62xf32>
    %c2 = arith.constant 2 : index
    %c0_11 = arith.constant 0 : index
    %c0_12 = arith.constant 0 : index
    %11 = vector.load %arg2[%c2, %c0_11, %c0_12] : memref<3x8x4xf32, #tpu.memory_space<vmem>>, vector<1x8x4xf32>
    %12 = vector.shape_cast %11 : vector<1x8x4xf32> to vector<8x4xf32>
    %c0_13 = arith.constant 0 : index
    %c0_14 = arith.constant 0 : index
    %c2_15 = arith.constant 2 : index
    %13 = vector.load %arg1[%c0_13, %c0_14, %c2_15] : memref<1x4x64xf32, #tpu.memory_space<vmem>>, vector<1x4x62xf32>
    %14 = vector.shape_cast %13 : vector<1x4x62xf32> to vector<4x62xf32>
    %cst_16 = arith.constant dense<0.000000e+00> : vector<8x62xf32>
    %15 = tpu.matmul %12, %14, %cst_16 {dimension_numbers = #tpu.dot_dimension_numbers<[1], [0], [0], [1], [0, 0, 1, 1], [], []>} : vector<8x4xf32>, vector<4x62xf32>, vector<8x62xf32> -> vector<8x62xf32>
    %16 = arith.addf %10, %15 : vector<8x62xf32>
    %c0_17 = arith.constant 0 : index
    %c0_18 = arith.constant 0 : index
    %17 = vector.load %arg3[%c0_17, %c0_18] : memref<8x1xf32, #tpu.memory_space<vmem>>, vector<8x1xf32>
    %18 = vector.broadcast %17 : vector<8x1xf32> to vector<8x62xf32>
    %19 = arith.addf %16, %18 : vector<8x62xf32>
    %cst_19 = arith.constant 0.000000e+00 : f32
    %20 = vector.broadcast %cst_19 : f32 to vector<8x62xf32>
    %21 = arith.maximumf %19, %20 : vector<8x62xf32>
    %22 = vector.extract_strided_slice %21 {offsets = [0, 0], sizes = [8, 61], strides = [1, 1]} : vector<8x62xf32> to vector<8x61xf32>
    %23 = vector.extract_strided_slice %21 {offsets = [0, 1], sizes = [8, 61], strides = [1, 1]} : vector<8x62xf32> to vector<8x61xf32>
    %24 = arith.maximumf %22, %23 : vector<8x61xf32>
    %25 = tpu.iota {dimensions = array<i32: 0>} : vector<61x31xi32>
    %26 = tpu.iota {dimensions = array<i32: 1>} : vector<61x31xi32>
    %c2_i32 = arith.constant 2 : i32
    %27 = vector.broadcast %c2_i32 : i32 to vector<61x31xi32>
    %28 = arith.muli %26, %27 : vector<61x31xi32>
    %29 = arith.cmpi eq, %25, %28 : vector<61x31xi32>
    %30 = arith.extui %29 : vector<61x31xi1> to vector<61x31xi32>
    %31 = arith.sitofp %30 : vector<61x31xi32> to vector<61x31xf32>
    %cst_20 = arith.constant dense<0.000000e+00> : vector<8x31xf32>
    %32 = tpu.matmul %24, %31, %cst_20 {dimension_numbers = #tpu.dot_dimension_numbers<[1], [0], [0], [1], [0, 0, 1, 1], [], []>, precision = #tpu.contract_precision<fp32>} : vector<8x61xf32>, vector<61x31xf32>, vector<8x31xf32> -> vector<8x31xf32>
    %c0_21 = arith.constant 0 : index
    %c0_22 = arith.constant 0 : index
    %33 = vector.load %arg9[%c0_21, %c0_22] : memref<8x31xf32, #tpu.memory_space<vmem>>, vector<8x31xf32>
    tpu.vector_store %arg9[%c0_21, %c0_22], %32 {strides = array<i32>} : memref<8x31xf32, #tpu.memory_space<vmem>>, vector<8x31xf32>,
    %c0_23 = arith.constant 0 : index
    %c0_24 = arith.constant 0 : index
    %c0_25 = arith.constant 0 : index
    %34 = vector.load %arg4[%c0_23, %c0_24, %c0_25] : memref<3x16x8xf32, #tpu.memory_space<vmem>>, vector<1x16x8xf32>
    %35 = vector.shape_cast %34 : vector<1x16x8xf32> to vector<16x8xf32>
    %c0_26 = arith.constant 0 : index
    %c0_27 = arith.constant 0 : index
    %36 = vector.load %arg9[%c0_26, %c0_27] : memref<8x31xf32, #tpu.memory_space<vmem>>, vector<8x29xf32>
    %cst_28 = arith.constant dense<0.000000e+00> : vector<16x29xf32>
    %37 = tpu.matmul %35, %36, %cst_28 {dimension_numbers = #tpu.dot_dimension_numbers<[1], [0], [0], [1], [0, 0, 1, 1], [], []>} : vector<16x8xf32>, vector<8x29xf32>, vector<16x29xf32> -> vector<16x29xf32>
    %c1_29 = arith.constant 1 : index
    %c0_30 = arith.constant 0 : index
    %c0_31 = arith.constant 0 : index
    %38 = vector.load %arg4[%c1_29, %c0_30, %c0_31] : memref<3x16x8xf32, #tpu.memory_space<vmem>>, vector<1x16x8xf32>
    %39 = vector.shape_cast %38 : vector<1x16x8xf32> to vector<16x8xf32>
    %c0_32 = arith.constant 0 : index
    %c1_33 = arith.constant 1 : index
    %40 = vector.load %arg9[%c0_32, %c1_33] : memref<8x31xf32, #tpu.memory_space<vmem>>, vector<8x29xf32>
    %cst_34 = arith.constant dense<0.000000e+00> : vector<16x29xf32>
    %41 = tpu.matmul %39, %40, %cst_34 {dimension_numbers = #tpu.dot_dimension_numbers<[1], [0], [0], [1], [0, 0, 1, 1], [], []>} : vector<16x8xf32>, vector<8x29xf32>, vector<16x29xf32> -> vector<16x29xf32>
    %42 = arith.addf %37, %41 : vector<16x29xf32>
    %c2_35 = arith.constant 2 : index
    %c0_36 = arith.constant 0 : index
    %c0_37 = arith.constant 0 : index
    %43 = vector.load %arg4[%c2_35, %c0_36, %c0_37] : memref<3x16x8xf32, #tpu.memory_space<vmem>>, vector<1x16x8xf32>
    %44 = vector.shape_cast %43 : vector<1x16x8xf32> to vector<16x8xf32>
    %c0_38 = arith.constant 0 : index
    %c2_39 = arith.constant 2 : index
    %45 = vector.load %arg9[%c0_38, %c2_39] : memref<8x31xf32, #tpu.memory_space<vmem>>, vector<8x29xf32>
    %cst_40 = arith.constant dense<0.000000e+00> : vector<16x29xf32>
    %46 = tpu.matmul %44, %45, %cst_40 {dimension_numbers = #tpu.dot_dimension_numbers<[1], [0], [0], [1], [0, 0, 1, 1], [], []>} : vector<16x8xf32>, vector<8x29xf32>, vector<16x29xf32> -> vector<16x29xf32>
    %47 = arith.addf %42, %46 : vector<16x29xf32>
    %c0_41 = arith.constant 0 : index
    %c0_42 = arith.constant 0 : index
    %48 = vector.load %arg5[%c0_41, %c0_42] : memref<16x1xf32, #tpu.memory_space<vmem>>, vector<16x1xf32>
    %49 = vector.broadcast %48 : vector<16x1xf32> to vector<16x29xf32>
    %50 = arith.addf %47, %49 : vector<16x29xf32>
    %cst_43 = arith.constant 0.000000e+00 : f32
    %51 = vector.broadcast %cst_43 : f32 to vector<16x29xf32>
    %52 = arith.maximumf %50, %51 : vector<16x29xf32>
    %53 = vector.extract_strided_slice %52 {offsets = [0, 0], sizes = [16, 28], strides = [1, 1]} : vector<16x29xf32> to vector<16x28xf32>
    %54 = vector.extract_strided_slice %52 {offsets = [0, 1], sizes = [16, 28], strides = [1, 1]} : vector<16x29xf32> to vector<16x28xf32>
    %55 = arith.maximumf %53, %54 : vector<16x28xf32>
    %56 = tpu.iota {dimensions = array<i32: 0>} : vector<28x14xi32>
    %57 = tpu.iota {dimensions = array<i32: 1>} : vector<28x14xi32>
    %c2_i32_44 = arith.constant 2 : i32
    %58 = vector.broadcast %c2_i32_44 : i32 to vector<28x14xi32>
    %59 = arith.muli %57, %58 : vector<28x14xi32>
    %60 = arith.cmpi eq, %56, %59 : vector<28x14xi32>
    %61 = arith.extui %60 : vector<28x14xi1> to vector<28x14xi32>
    %62 = arith.sitofp %61 : vector<28x14xi32> to vector<28x14xf32>
    %cst_45 = arith.constant dense<0.000000e+00> : vector<16x14xf32>
    %63 = tpu.matmul %55, %62, %cst_45 {dimension_numbers = #tpu.dot_dimension_numbers<[1], [0], [0], [1], [0, 0, 1, 1], [], []>, precision = #tpu.contract_precision<fp32>} : vector<16x28xf32>, vector<28x14xf32>, vector<16x14xf32> -> vector<16x14xf32>
    %c0_46 = arith.constant 0 : index
    %c0_47 = arith.constant 0 : index
    %64 = vector.load %arg10[%c0_46, %c0_47] : memref<16x14xf32, #tpu.memory_space<vmem>>, vector<16x14xf32>
    tpu.vector_store %arg10[%c0_46, %c0_47], %63 {strides = array<i32>} : memref<16x14xf32, #tpu.memory_space<vmem>>, vector<16x14xf32>,
    %c0_48 = arith.constant 0 : index
    %c0_49 = arith.constant 0 : index
    %c0_50 = arith.constant 0 : index
    %65 = vector.load %arg6[%c0_48, %c0_49, %c0_50] : memref<3x16x16xf32, #tpu.memory_space<vmem>>, vector<1x16x16xf32>
    %66 = vector.shape_cast %65 : vector<1x16x16xf32> to vector<16x16xf32>
    %c0_51 = arith.constant 0 : index
    %c0_52 = arith.constant 0 : index
    %67 = vector.load %arg10[%c0_51, %c0_52] : memref<16x14xf32, #tpu.memory_space<vmem>>, vector<16x12xf32>
    %cst_53 = arith.constant dense<0.000000e+00> : vector<16x12xf32>
    %68 = tpu.matmul %66, %67, %cst_53 {dimension_numbers = #tpu.dot_dimension_numbers<[1], [0], [0], [1], [0, 0, 1, 1], [], []>} : vector<16x16xf32>, vector<16x12xf32>, vector<16x12xf32> -> vector<16x12xf32>
    %c1_54 = arith.constant 1 : index
    %c0_55 = arith.constant 0 : index
    %c0_56 = arith.constant 0 : index
    %69 = vector.load %arg6[%c1_54, %c0_55, %c0_56] : memref<3x16x16xf32, #tpu.memory_space<vmem>>, vector<1x16x16xf32>
    %70 = vector.shape_cast %69 : vector<1x16x16xf32> to vector<16x16xf32>
    %c0_57 = arith.constant 0 : index
    %c1_58 = arith.constant 1 : index
    %71 = vector.load %arg10[%c0_57, %c1_58] : memref<16x14xf32, #tpu.memory_space<vmem>>, vector<16x12xf32>
    %cst_59 = arith.constant dense<0.000000e+00> : vector<16x12xf32>
    %72 = tpu.matmul %70, %71, %cst_59 {dimension_numbers = #tpu.dot_dimension_numbers<[1], [0], [0], [1], [0, 0, 1, 1], [], []>} : vector<16x16xf32>, vector<16x12xf32>, vector<16x12xf32> -> vector<16x12xf32>
    %73 = arith.addf %68, %72 : vector<16x12xf32>
    %c2_60 = arith.constant 2 : index
    %c0_61 = arith.constant 0 : index
    %c0_62 = arith.constant 0 : index
    %74 = vector.load %arg6[%c2_60, %c0_61, %c0_62] : memref<3x16x16xf32, #tpu.memory_space<vmem>>, vector<1x16x16xf32>
    %75 = vector.shape_cast %74 : vector<1x16x16xf32> to vector<16x16xf32>
    %c0_63 = arith.constant 0 : index
    %c2_64 = arith.constant 2 : index
    %76 = vector.load %arg10[%c0_63, %c2_64] : memref<16x14xf32, #tpu.memory_space<vmem>>, vector<16x12xf32>
    %cst_65 = arith.constant dense<0.000000e+00> : vector<16x12xf32>
    %77 = tpu.matmul %75, %76, %cst_65 {dimension_numbers = #tpu.dot_dimension_numbers<[1], [0], [0], [1], [0, 0, 1, 1], [], []>} : vector<16x16xf32>, vector<16x12xf32>, vector<16x12xf32> -> vector<16x12xf32>
    %78 = arith.addf %73, %77 : vector<16x12xf32>
    %c0_66 = arith.constant 0 : index
    %c0_67 = arith.constant 0 : index
    %79 = vector.load %arg7[%c0_66, %c0_67] : memref<16x1xf32, #tpu.memory_space<vmem>>, vector<16x1xf32>
    %80 = vector.broadcast %79 : vector<16x1xf32> to vector<16x12xf32>
    %81 = arith.addf %78, %80 : vector<16x12xf32>
    %cst_68 = arith.constant 0.000000e+00 : f32
    %82 = vector.broadcast %cst_68 : f32 to vector<16x12xf32>
    %83 = arith.maximumf %81, %82 : vector<16x12xf32>
    %84 = vector.extract_strided_slice %83 {offsets = [0, 0], sizes = [16, 11], strides = [1, 1]} : vector<16x12xf32> to vector<16x11xf32>
    %85 = vector.extract_strided_slice %83 {offsets = [0, 1], sizes = [16, 11], strides = [1, 1]} : vector<16x12xf32> to vector<16x11xf32>
    %86 = arith.maximumf %84, %85 : vector<16x11xf32>
    %87 = tpu.iota {dimensions = array<i32: 0>} : vector<11x6xi32>
    %88 = tpu.iota {dimensions = array<i32: 1>} : vector<11x6xi32>
    %c2_i32_69 = arith.constant 2 : i32
    %89 = vector.broadcast %c2_i32_69 : i32 to vector<11x6xi32>
    %90 = arith.muli %88, %89 : vector<11x6xi32>
    %91 = arith.cmpi eq, %87, %90 : vector<11x6xi32>
    %92 = arith.extui %91 : vector<11x6xi1> to vector<11x6xi32>
    %93 = arith.sitofp %92 : vector<11x6xi32> to vector<11x6xf32>
    %cst_70 = arith.constant dense<0.000000e+00> : vector<16x6xf32>
    %94 = tpu.matmul %86, %93, %cst_70 {dimension_numbers = #tpu.dot_dimension_numbers<[1], [0], [0], [1], [0, 0, 1, 1], [], []>, precision = #tpu.contract_precision<fp32>} : vector<16x11xf32>, vector<11x6xf32>, vector<16x6xf32> -> vector<16x6xf32>
    %c0_71 = arith.constant 0 : index
    %c0_72 = arith.constant 0 : index
    %c0_73 = arith.constant 0 : index
    %95 = vector.load %arg8[%c0_71, %c0_72, %c0_73] : memref<1x16x6xf32, #tpu.memory_space<vmem>>, vector<1x16x6xf32>
    %96 = vector.shape_cast %95 : vector<1x16x6xf32> to vector<16x6xf32>
    %97 = vector.shape_cast %94 : vector<16x6xf32> to vector<1x16x6xf32>
    tpu.vector_store %arg8[%c0_71, %c0_72, %c0_73], %97 {strides = array<i32>} : memref<1x16x6xf32, #tpu.memory_space<vmem>>, vector<1x16x6xf32>,
    return
  }
  func.func @transform_0(%arg0: i32) -> (i32, i32, i32) {
    %c0_i32 = arith.constant 0 : i32
    %c0_i32_0 = arith.constant 0 : i32
    %c0_i32_1 = arith.constant 0 : i32
    return %arg0, %c0_i32, %c0_i32_0 : i32, i32, i32
  }
  func.func @transform_1(%arg0: i32) -> (i32, i32, i32) {
    %c0_i32 = arith.constant 0 : i32
    %c0_i32_0 = arith.constant 0 : i32
    %c0_i32_1 = arith.constant 0 : i32
    %c0_i32_2 = arith.constant 0 : i32
    return %c0_i32, %c0_i32_0, %c0_i32_1 : i32, i32, i32
  }
  func.func @transform_2(%arg0: i32) -> (i32, i32) {
    %c0_i32 = arith.constant 0 : i32
    %c0_i32_0 = arith.constant 0 : i32
    %c0_i32_1 = arith.constant 0 : i32
    return %c0_i32, %c0_i32_0 : i32, i32
  }
  func.func @transform_3(%arg0: i32) -> (i32, i32, i32) {
    %c0_i32 = arith.constant 0 : i32
    %c0_i32_0 = arith.constant 0 : i32
    %c0_i32_1 = arith.constant 0 : i32
    %c0_i32_2 = arith.constant 0 : i32
    return %c0_i32, %c0_i32_0, %c0_i32_1 : i32, i32, i32
  }
  func.func @transform_4(%arg0: i32) -> (i32, i32) {
    %c0_i32 = arith.constant 0 : i32
    %c0_i32_0 = arith.constant 0 : i32
    %c0_i32_1 = arith.constant 0 : i32
    return %c0_i32, %c0_i32_0 : i32, i32
  }
  func.func @transform_5(%arg0: i32) -> (i32, i32, i32) {
    %c0_i32 = arith.constant 0 : i32
    %c0_i32_0 = arith.constant 0 : i32
    %c0_i32_1 = arith.constant 0 : i32
    %c0_i32_2 = arith.constant 0 : i32
    return %c0_i32, %c0_i32_0, %c0_i32_1 : i32, i32, i32
  }
  func.func @transform_6(%arg0: i32) -> (i32, i32) {
    %c0_i32 = arith.constant 0 : i32
    %c0_i32_0 = arith.constant 0 : i32
    %c0_i32_1 = arith.constant 0 : i32
    return %c0_i32, %c0_i32_0 : i32, i32
  }
  func.func @transform_7(%arg0: i32) -> (i32, i32, i32) {
    %c0_i32 = arith.constant 0 : i32
    %c0_i32_0 = arith.constant 0 : i32
    %c0_i32_1 = arith.constant 0 : i32
    return %arg0, %c0_i32, %c0_i32_0 : i32, i32, i32
  }
}

</mosaic_0001>

<bundles_post_ra>
// kernel: tpu_custom_call.1
= control target key start
LH: loop header
LB: loop body
LE: loop exit
PB: predicated region body
PF: predicated region fallthrough
CT: control target
= control target key end

     0   :  { %s3603_s24 = smov 0   ;;  %s4034_s0 = inlined_call_operand.vmem [shape: f32[2,4,64], index: 0, kind: input, shape index: {}]   ;;  %s4035_s1 = inlined_call_operand.vmem [shape: f32[3,8,4], index: 1, kind: input, shape index: {}]   ;;  %s4036_s2 = inlined_call_operand.vmem [shape: f32[8,1], index: 2, kind: input, shape index: {}]   ;;  %s4037_s3 = inlined_call_operand.vmem [shape: f32[3,16,8], index: 3, kind: input, shape index: {}]   ;;  %s4038_s4 = inlined_call_operand.vmem [shape: f32[16,1], index: 4, kind: input, shape index: {}]   ;;  %s4039_s5 = inlined_call_operand.vmem [shape: f32[3,16,16], index: 5, kind: input, shape index: {}]   ;;  %s4040_s6 = inlined_call_operand.vmem [shape: f32[16,1], index: 6, kind: input, shape index: {}]   ;;  %s4041_s7 = inlined_call_operand.vmem [shape: f32[2,16,6], index: 7, kind: output, shape index: {}]  }
   0x1 LB: > { %s2807_s25 = sadd.s32 4294967295, %s3553_s24   ;;  %p2811_p0 = scmp.ge.s32.totalorder %s3553_s24, 1  ;;  %s3553_s24 = sphi %s3603_s24, %s17_s24  }
   0x2   : > { %p236_p1 = scmp.lt.s32.totalorder %s3553_s24, 3 }
   0x4   : > { %p237_p2 = pnand %p2811_p0, %p236_p1 }
   0x5   : > { %p267_p3 = scmp.lt.s32.totalorder (!%p237_p2), %s2807_s25, 1  ;;  %v3555_v0 = vmov (!%p237_p2), 0.0   ;;  %v515_v1 = vld [vmem:[%s4036_s2] sm:$0xff] (!%p237_p2)  ;;  %vm3556_vm0 = vmmov (!%p237_p2), 0   ;;  %v3557_v2 = vmov (!%p237_p2), 0   ;;  %vm287_vm1 = vcmask (!%p237_p2), 1043456  }
   0x6   : > { %240 = sbr.rel (%p237_p2) target bundleno = 2264 (0x8d8), region = 48  ;;  %3037 = vmatprep.subr.mxu0 (!%p237_p2), %v3555_v0  ;;  %3042 = vmatprep.subr.mxu1 (!%p237_p2), %v3555_v0  ;;  %vm283_vm2 = vcmask (!%p237_p2), 31744   ;;  %v276_v3 = vld [vmem:[%s4035_s1] sm:$0xff] (!%p237_p2)  ;;  %s3558_s11 = smov (!%p237_p2), 127   ;;  %v2815_v5 = vld [vmem:[%s4035_s1 + $0x8] sm:$0xff] (!%p237_p2)  ;;  %v2820_v7 = vld [vmem:[%s4035_s1 + $0x10] sm:$0xff] (!%p237_p2)  ;;  %v528_v9 = vlaneseq (!%p237_p2) }
   0x7   : > { %3039 = vmatprep.mubr.msk.f32.mxu0 (!%p237_p2), %vm3556_vm0, %v3555_v0  ;;  %3044 = vmatprep.mubr.msk.f32.mxu1 (!%p237_p2), %vm3556_vm0, %v3555_v0  ;;  %s3559_s12 = smov (!%p237_p2), 126   ;;  %v3560_v10 = vmov (!%p237_p2), 0.0|0.0   ;;  %v3561_v18 = vmov (!%p237_p2), 1.0|1.0   ;;  %v3562_v36 = vmov (!%p237_p2), 1.0   ;;  %vm568_vm14 = vcmask (!%p237_p2), 1044480  }
   0x8   : > { %3535 = vset.pattern.permute.xlu1 (!%p237_p2), %v3557_v2  ;;  %3536 = vset.pattern.permute.xlu0 (!%p237_p2), %v3557_v2  ;;  %v3649_v12 = vshrl.u32 (!%p237_p2), %v528_v9, 7  ;;  %v538_v13 = vand.u32 (!%p237_p2), 127, %v528_v9  ;;  %v2877_v17 = vld [vmem:[%s4039_s5 + $0x10] sm:$0xff] (!%p237_p2) }
   0x9   : > { %518 = vperm.xlu1 (!%p237_p2), %3535, %v515_v1  }
   0xa   : > { %v3652_v15 = vadd.s32 (!%p237_p2), 8, %v3649_v12  ;;  %v3654_v16 = vmul.u32 (!%p237_p2), 2, %v538_v13  ;;  %v3675_v19 = vadd.s32 (!%p237_p2), 16, %v3649_v12  ;;  %v532_v20 = vadd.s32 (!%p237_p2), 24, %v3649_v12 }
   0xb   : > { %v533_v22 = vadd.s32 (!%p237_p2), 32, %v3649_v12  ;;  %v534_v23 = vadd.s32 (!%p237_p2), 40, %v3649_v12  ;;  %v536_v27 = vadd.s32 (!%p237_p2), 56, %v3649_v12  ;;  %v535_v29 = vadd.s32 (!%p237_p2), 48, %v3649_v12 }
   0xc   : > { %vm540_vm3 = vcmp.eq.s32.totalorder (!%p237_p2), %v3649_v12, %v3654_v16  ;;  %vm541_vm4 = vcmp.eq.s32.totalorder (!%p237_p2), %v3652_v15, %v3654_v16  ;;  %vm542_vm6 = vcmp.eq.s32.totalorder (!%p237_p2), %v3675_v19, %v3654_v16  ;;  %vm543_vm7 = vcmp.eq.s32.totalorder (!%p237_p2), %v532_v20, %v3654_v16 }
   0xd   : > { %s4055_s25 = smov (!%p267_p3, %s2807_s25), 1  ;;  %vm3666_vm5 = vmpackc.low %vm541_vm4, %vm540_vm3  ;;  %vm544_vm9 = vcmp.eq.s32.totalorder %v533_v22, %v3654_v16  ;;  %vm545_vm10 = vcmp.eq.s32.totalorder %v534_v23, %v3654_v16  ;;  %vm547_vm12 = vcmp.eq.s32.totalorder %v536_v27, %v3654_v16  ;;  %v3716_v34 = vsel %vm543_vm7, 1.0, %v3555_v0 }
   0xe   : > { %s2812_s28 = sshll.u32 %s4055_s25, 2  ;;  %vm3686_vm8 = vmpackc.low %vm543_vm7, %vm542_vm6  ;;  %v2830_v35 = vsel %vm547_vm12, 1.0, %v3555_v0  ;;  %v3721_v37 = vpack.c.bf16 %v3716_v34, %v3562_v36  ;;  %v2827_v38 = vsel %vm544_vm9, 1.0, %v3555_v0  ;;  %v2828_v40 = vsel %vm545_vm10, 1.0, %v3555_v0 }
   0xf   : > { %s270_s8 = scalar_lea.vmem %s4034_s0, %s2812_s28  ;;  %vm3703_vm11 = vmpackc.low %vm545_vm10, %vm544_vm9  ;;  %vm546_vm13 = vcmp.eq.s32.totalorder %v535_v29, %v3654_v16  ;;  %v3730_v41 = vsub.f32 %v2827_v38, %v2827_v38  ;;  %v3733_v42 = vpack.c.bf16 %v2830_v35, %v3562_v36  ;;  %v3735_v44 = vsub.f32 %v2828_v40, %v2828_v40 }
  0x10   : > { %v277_v4 = vld [vmem:[%s270_s8] sm:$0xf]  ;;  %v2829_v45 = vsel %vm546_vm13, 1.0, %v3555_v0  ;;  %v570_v46 = vsel %vm568_vm14, %v2830_v35, 0  ;;  %vm3738_vm15 = vmpackc.low %vm568_vm14, %vm546_vm13  ;;  %v678_v13 = vsub.f32 %v3716_v34, %v3716_v34  ;;  %vm2749_vm10 = vcmask 48128  }
  0x11   : > { %281 = vrot.lane.b32.xlu0 %v277_v4, %s3558_s11  ;;  %3043 = vmatpush3.msk.msra.mxu1 %vm287_vm1, %v277_v4  ;;  %v3747_v48 = vsub.f32 %v2829_v45, %v2829_v45  ;;  %v686_v49 = vand.u32 4294901760, %v3730_v41  ;;  %v3750_v50 = vsub.f32 %v570_v46, %v570_v46  ;;  %v693_v51 = vand.u32 4294901760, %v3735_v44  ;;  %vm3921_vm7 = vmpackc.low %vm287_vm1, %vm542_vm6 }
  0x12   : > { %3045 = vmatmul.mubr.msk.f32.vlgmr.msra.gmra.mrb[0].mxu1 %vm283_vm2, %v276_v3  ;;  %3310 = vmatprep.subr.bf16.mxu1 %v3560_v10  ;;  %v3342_v1 = vpack.c.bf16 %v3735_v44, %v3730_v41  ;;  %v679_v27 = vand.u32 4294901760, %v678_v13 }
  0x13   : > { %3068 = vmatprep.mubr.msk.f32.mxu1 %vm3556_vm0, %v3555_v0  ;;  %3312 = vmatpush3.bf16.msk.msra.mxu1 %vm3666_vm5, %v3561_v18  ;;  %v687_v52 = vsub.f32 %v3730_v41, %v686_v49  ;;  %v694_v53 = vsub.f32 %v3735_v44, %v693_v51  ;;  %v700_v55 = vand.u32 4294901760, %v3747_v48  ;;  %v707_v57 = vand.u32 4294901760, %v3750_v50 }
  0x14   : > { %3313 = vmatprep.subr.bf16.mxu1 %v3560_v10  ;;  %v3345_v2 = vpack.c.bf16 %v3750_v50, %v3747_v48  ;;  %v3763_v3 = vpack.c.bf16 %v693_v51, %v686_v49  ;;  %v680_v35 = vsub.f32 %v678_v13, %v679_v27 }
  0x15   : > { %437 = vrot.lane.b32.xlu0 %v277_v4, %s3559_s12  ;;  %v688_v54 = vand.u32 4294901760, %v687_v52  ;;  %v695_v56 = vand.u32 4294901760, %v694_v53  ;;  %v701_v58 = vsub.f32 %v3747_v48, %v700_v55  ;;  %v708_v60 = vsub.f32 %v3750_v50, %v707_v57  ;;  %v2856_v52 = vld [vmem:[%s4037_s3 + $0x18] sm:$0xff]  ;;  %v1111_v53 = vld [vmem:[%s4037_s3] sm:$0xff] }
  0x16   : > { %v3765_v4 = vpack.c.bf16 %v707_v57, %v700_v55  ;;  %v1112_v55 = vld [vmem:[%s4037_s3 + $0x8] sm:$0xff] }
  0x17   : > { %3315 = vmatpush3.bf16.msk.msra.mxu1 %vm3686_vm8, %v3561_v18  ;;  %v3330_v59 = vpack.c.bf16 %v695_v56, %v688_v54  ;;  %v702_v61 = vand.u32 4294901760, %v701_v58  ;;  %v709_v62 = vand.u32 4294901760, %v708_v60  ;;  %v2861_v56 = vld [vmem:[%s4037_s3 + $0x20] sm:$0xff]  ;;  %v2862_v57 = vld [vmem:[%s4037_s3 + $0x28] sm:$0xff] }
  0x18   : > { %3316 = vmatprep.subr.bf16.mxu1 %v3560_v10 }
  0x19   : > { %v3333_v63 = vpack.c.bf16 %v709_v62, %v702_v61 }
  0x1b   : > { %3318 = vmatpush3.bf16.msk.msra.mxu1 %vm3703_vm11, %v3561_v18 }
  0x1c   : > { %3319 = vmatprep.subr.bf16.mxu1 %v3560_v10 }
  0x1f   : > { %3322 = vmatpush3.bf16.msk.msra.mxu1 %vm3738_vm15, %v3733_v42 }
  0x20   : > { %3323 = vmatprep.subr.bf16.mxu1 %v3560_v10 }
  0x83   : > { %v282_v6 = vpop.permute.xlu0 %281 }
  0x84   : > { %3038 = vmatpush3.msk.msra.mxu0 %vm287_vm1, %v282_v6  ;;  %v2823_v6 = vsel %vm540_vm3, 1.0, %v3555_v0 }
  0x85   : > { %3040 = vmatmul.mubr.msk.f32.vlgmr.msra.gmra.mrb[0].mxu0 %vm283_vm2, %v2815_v5  ;;  %3047 = vmatprep.subr.mxu0 %v3555_v0  ;;  %v3771_v5 = vsel %vm541_vm4, 1.0, %v3555_v0  ;;  %vm1109_vm4 = vcmask 252928  }
  0x86   : > { %3049 = vmatprep.mubr.msk.f32.mxu0 %vm3556_vm0, %v3555_v0  ;;  %v664_v9 = vsub.f32 %v3771_v5, %v3771_v5 }
  0x87   : > { %v438_v8 = vpop.permute.xlu0 %437 }
  0x88   : > { %3048 = vmatpush3.msk.msra.mxu0 %vm287_vm1, %v438_v8  ;;  %v519_v31 = vpop.permute.xlu1 %518  ;;  %v3781_v8 = vsub.f32 %v2823_v6, %v2823_v6  ;;  %v665_v15 = vand.u32 4294901760, %v664_v9 }
  0x89   : > { %3050 = vmatmul.mubr.msk.f32.vlgmr.msra.gmra.mrb[2].mxu0 %vm283_vm2, %v2820_v7  ;;  %v2825_v7 = vsel %vm542_vm6, 1.0, %v3555_v0  ;;  %vm564_vm2 = vcmask 498688   ;;  %vm1399_vm6 = vcmask 228352  }
  0x8a   : > { %v3817_v46 = vpack.c.bf16 %v664_v9, %v3781_v8 }
  0xe5   : > { %v431_v11 = vpop.f32.mrb[0].mxu1 }
  0xe6   : > { %v3046_v14 = vpop.f32.mrb[1].mxu1 }
  0xe7   : > { %v3790_v14 = vand.u32 4294901760, %v3781_v8 }
  0xe9   : > { %v3847_v49 = vpack.c.bf16 %v665_v15, %v3790_v14 }
 0x158   : > { %v356_v24 = vpop.f32.mrb[0].mxu0 }
 0x159   : > { %v432_v25 = vadd.f32 %v431_v11, %v356_v24  ;;  %v3041_v26 = vpop.f32.mrb[1].mxu0  ;;  %v3785_v11 = vsub.f32 %v2825_v7, %v2825_v7 }
 0x15a   : > { %v666_v26 = vsub.f32 %v664_v9, %v665_v15 }
 0x15b   : > { %v3793_v23 = vand.u32 4294901760, %v3785_v11  ;;  %v3339_v48 = vpack.c.bf16 %v678_v13, %v3785_v11 }
 0x15c   : > { %v510_v30 = vpop.f32.mrb[2].mxu0 }
 0x15d   : > { %v514_v32 = vadd.f32 %v510_v30, %v432_v25  ;;  %v3051_v33 = vpop.f32.mrb[3].mxu0  ;;  %v659_v25 = vsub.f32 %v3781_v8, %v3790_v14  ;;  %v3364_v50 = vpack.c.bf16 %v679_v27, %v3793_v23 }
 0x15e   : > { %v673_v33 = vsub.f32 %v3785_v11, %v3793_v23 }
 0x15f   : > { %v521_v39 = vadd.f32 %v519_v31, %v514_v32  ;;  %v3800_v31 = vand.u32 4294901760, %v659_v25  ;;  %v667_v32 = vand.u32 4294901760, %v666_v26 }
 0x160   : > { %v3807_v41 = vand.u32 4294901760, %v673_v33 }
 0x161   : > { %v522_v43 = vmax.f32 %v521_v39, 0.0  ;;  %v3805_v40 = vpack.c.bf16 %v667_v32, %v3800_v31 }
 0x163   : > { %524 = vrot.lane.b32.xlu1 %v522_v43, %s3558_s11 }
 0x1d5   : > { %v525_v20 = vpop.permute.xlu1 %524 }
 0x1d6   : > { %v527_v22 = vmax.f32 %v522_v43, %v525_v20  ;;  %v681_v43 = vand.u32 4294901760, %v680_v35 }
 0x1d8   : > { %v566_v24 = vsel %vm564_vm2, %v527_v22, 0  ;;  %v3327_v45 = vpack.c.bf16 %v681_v43, %v3807_v41 }
 0x1d9   : > { %v3797_v29 = vand.u32 4294901760, %v566_v24 }
 0x1db   : > { %v646_v30 = vsub.f32 %v566_v24, %v3797_v29 }
 0x1dd   : > { %v647_v38 = vand.u32 4294901760, %v646_v30 }
 0x1df   : > { %v648_v39 = vsub.f32 %v646_v30, %v647_v38 }
 0x1e1   : > { %v649_v44 = vand.u32 4294901760, %v648_v39 }
 0x1e3   : > { %3069 = vmatmul.mubr.f32.vlgmr.msra.gmra.mrb[2].mxu1 %v649_v44 }
 0x1e4   : > { %3325 = vmatpush3.bf16.msra.mxu1 %v3805_v40  ;;  %3087 = vmatprep.mubr.msk.f32.mxu1 %vm3556_vm0, %v3555_v0 }
 0x1e5   : > { %3326 = vmatprep.subr.bf16.mxu1 %v3560_v10 }
 0x1e8   : > { %3328 = vmatpush3.bf16.msra.mxu1 %v3327_v45 }
 0x1e9   : > { %3329 = vmatprep.subr.bf16.mxu1 %v3560_v10 }
 0x1ec   : > { %3331 = vmatpush3.bf16.msra.mxu1 %v3330_v59 }
 0x1ed   : > { %3332 = vmatprep.subr.bf16.mxu1 %v3560_v10 }
 0x1f0   : > { %3334 = vmatpush3.bf16.msra.mxu1 %v3333_v63 }
 0x1f1   : > { %3335 = vmatprep.subr.bf16.mxu1 %v3560_v10 }
 0x1f3   : > { %3088 = vmatmul.mubr.f32.vlgmr.msra.gmra.mrb[2].mxu1 %v3797_v29 }
 0x1f4   : > { %3337 = vmatpush3.bf16.msra.mxu1 %v3817_v46  ;;  %3106 = vmatprep.mubr.msk.f32.mxu1 %vm3556_vm0, %v3555_v0 }
 0x1f5   : > { %3338 = vmatprep.subr.bf16.mxu1 %v3560_v10 }
 0x1f8   : > { %3340 = vmatpush3.bf16.msra.mxu1 %v3339_v48  ;;  %v2210_v48 = vld [vmem:[%s4040_s6] sm:$0xff] }
 0x1f9   : > { %3341 = vmatprep.subr.bf16.mxu1 %v3560_v10 }
 0x1fc   : > { %3343 = vmatpush3.bf16.msra.mxu1 %v3342_v1 }
 0x1fd   : > { %3344 = vmatprep.subr.bf16.mxu1 %v3560_v10 }
 0x200   : > { %3346 = vmatpush3.bf16.msra.mxu1 %v3345_v2 }
 0x201   : > { %3347 = vmatprep.subr.bf16.mxu1 %v3560_v10 }
 0x203   : > { %3107 = vmatmul.mubr.f32.vlgmr.msra.gmra.mrb[2].mxu1 %v646_v30 }
 0x204   : > { %3349 = vmatpush3.bf16.msk.msra.mxu1 %vm3666_vm5, %v3561_v18  ;;  %3125 = vmatprep.mubr.msk.f32.mxu1 %vm3556_vm0, %v3555_v0 }
 0x205   : > { %3350 = vmatprep.subr.bf16.mxu1 %v3560_v10 }
 0x208   : > { %3352 = vmatpush3.bf16.msk.msra.mxu1 %vm3686_vm8, %v3561_v18 }
 0x209   : > { %3353 = vmatprep.subr.bf16.mxu1 %v3560_v10 }
 0x20c   : > { %3355 = vmatpush3.bf16.msk.msra.mxu1 %vm3703_vm11, %v3561_v18 }
 0x20d   : > { %3356 = vmatprep.subr.bf16.mxu1 %v3560_v10 }
 0x210   : > { %3359 = vmatpush3.bf16.msk.msra.mxu1 %vm3738_vm15, %v3733_v42 }
 0x211   : > { %3360 = vmatprep.subr.bf16.mxu1 %v3560_v10 }
 0x213   : > { %3126 = vmatmul.mubr.f32.vlgmr.msra.gmra.mrb[2].mxu1 %v647_v38 }
 0x214   : > { %3362 = vmatpush3.bf16.msra.mxu1 %v3847_v49  ;;  %3144 = vmatprep.mubr.msk.f32.mxu1 %vm3556_vm0, %v3555_v0 }
 0x215   : > { %3363 = vmatprep.subr.bf16.mxu1 %v3560_v10 }
 0x218   : > { %3365 = vmatpush3.bf16.msra.mxu1 %v3364_v50 }
 0x219   : > { %3366 = vmatprep.subr.bf16.mxu1 %v3560_v10 }
 0x21c   : > { %3368 = vmatpush3.bf16.msra.mxu1 %v3763_v3  ;;  %v1407_v3 = vsel %vm287_vm1, %v3716_v34, 0  ;;  %vm1937_vm1 = vcmask 113664  }
 0x21d   : > { %3369 = vmatprep.subr.bf16.mxu1 %v3560_v10 }
 0x220   : > { %3371 = vmatpush3.bf16.msra.mxu1 %v3765_v4  ;;  %v1521_v4 = vsub.f32 %v1407_v3, %v1407_v3 }
 0x221   : > { %3372 = vmatprep.subr.bf16.mxu1 %v3560_v10 }
 0x222   : > { %v1522_v15 = vand.u32 4294901760, %v1521_v4  ;;  %v3407_v44 = vpack.c.bf16 %v1521_v4, %v3785_v11 }
 0x223   : > { %3145 = vmatmul.mubr.f32.vlgmr.msra.gmra.mrb[2].mxu1 %v3797_v29 }
 0x224   : > { %3374 = vmatpush3.bf16.msk.msra.mxu1 %vm3666_vm5, %v3561_v18  ;;  %3163 = vmatprep.mubr.msk.f32.mxu1 %vm3556_vm0, %v3555_v0  ;;  %v2855_v0 = vld [vmem:[%s4037_s3 + $0x10] sm:$0xff]  ;;  %vm1121_vm0 = vcmask 64512   ;;  %v1523_v27 = vsub.f32 %v1521_v4, %v1522_v15  ;;  %v3425_v11 = vpack.c.bf16 %v1522_v15, %v3793_v23 }
 0x225   : > { %3375 = vmatprep.subr.bf16.mxu1 %v3560_v10  ;;  %3168 = vmatprep.mubr.msk.f32.mxu0 %vm1121_vm0, %v2855_v0 }
 0x226   : > { %v1524_v35 = vand.u32 4294901760, %v1523_v27 }
 0x228   : > { %3377 = vmatpush3.bf16.msk.msra.mxu1 %vm3686_vm8, %v3561_v18  ;;  %v3399_v43 = vpack.c.bf16 %v1524_v35, %v3807_v41  ;;  %vm2243_vm8 = vcmask 1042432  }
 0x229   : > { %3378 = vmatprep.subr.bf16.mxu1 %v3560_v10  ;;  %v2245_v59 = vsel %vm2243_vm8, %v3771_v5, 0  ;;  %vm4006_vm9 = vmpackc.low %vm2243_vm8, %vm540_vm3  ;;  %vm2236_vm3 = vcmask 89088  }
 0x22c   : > { %3380 = vmatpush3.bf16.msk.msra.mxu1 %vm3703_vm11, %v3561_v18 }
 0x22d   : > { %3381 = vmatprep.subr.bf16.mxu1 %v3560_v10  ;;  %v1374_v10 = vld [vmem:[%s4038_s4 + $0x8] sm:$0xff] }
 0x230   : > { %3384 = vmatpush3.bf16.msk.msra.mxu1 %vm3738_vm15, %v3733_v42  ;;  %v1373_v42 = vld [vmem:[%s4038_s4] sm:$0xff] }
 0x233   : > { %3164 = vmatmul.mubr.f32.vlgmr.msra.gmra.mrb[2].mxu1 %v3797_v29 }
 0x306   : > { %v1105_v21 = vpop.f32.mrb[2].mxu1 }
 0x307   : > { %1110 = vst.msk [vmem:[#allocation2] sm:$0xff] %vm1109_vm4, %v1105_v21  ;;  %v3165_v28 = vpop.f32.mrb[3].mxu1 }
 0x30e   : > { %v1113_v51 = vld [vmem:[#allocation2] sm:$0xff] }
 0x30f   : > { %1287 = vrot.lane.b32.xlu1 %v1113_v51, %s3559_s12  ;;  %1118 = vrot.lane.b32.xlu0 %v1113_v51, %s3558_s11 }
 0x313   : > { %1382 = vperm.xlu1 %3535, %v1374_v10   ;;  %1377 = vperm.xlu0 %3536, %v1373_v42   ;;  %v2878_v42 = vld [vmem:[%s4039_s5 + $0x18] sm:$0xff] }
 0x381   : > { %v1119_v47 = vpop.permute.xlu0 %1118  ;;  %v1288_v54 = vpop.permute.xlu1 %1287 }
 0x382   : > { %3166 = vmatprep.subr.mxu0 %v1119_v47 }
 0x383   : > { %3167 = vmatpush3.msra.mxu0 %v1119_v47  ;;  %v1940_v47 = vld [vmem:[%s4039_s5] sm:$0xff] }
 0x384   : > { %3169 = vmatmul.mubr.msk.f32.vlgmr.msra.gmra.mrb[4].mxu0 %vm1121_vm0, %v2856_v52  ;;  %3171 = vmatprep.subr.mxu0 %v1113_v51 }
 0x385   : > { %3172 = vmatpush3.msra.mxu0 %v1113_v51  ;;  %3173 = vmatprep.mubr.msk.f32.mxu0 %vm1121_vm0, %v1111_v53  ;;  %v1941_v53 = vld [vmem:[%s4039_s5 + $0x8] sm:$0xff] }
 0x386   : > { %3176 = vmatprep.subr.mxu0 %v1288_v54 }
 0x38c   : > { %3174 = vmatmul.mubr.msk.f32.vlgmr.msra.gmra.mrb[4].mxu0 %vm1121_vm0, %v1112_v55  ;;  %v2884_v55 = vld [vmem:[%s4039_s5 + $0x28] sm:$0xff] }
 0x38d   : > { %3177 = vmatpush3.msra.mxu0 %v1288_v54  ;;  %3178 = vmatprep.mubr.msk.f32.mxu0 %vm1121_vm0, %v2861_v56  ;;  %v2883_v54 = vld [vmem:[%s4039_s5 + $0x20] sm:$0xff]  ;;  %v3451_v56 = vpack.c.bf16 %v3771_v5, %v3562_v36 }
 0x38e   : > { %3386 = vmatprep.subr.msk.bf16.mxu0 %vm3666_vm5, %v3561_v18 }
 0x392   : > { %v1378_v58 = vpop.permute.xlu0 %1377  ;;  %v1383_v60 = vpop.permute.xlu1 %1382 }
 0x394   : > { %3179 = vmatmul.mubr.msk.f32.vlgmr.msra.gmra.mrb[4].mxu0 %vm1121_vm0, %v2862_v57 }
 0x395   : > { %3388 = vmatpush3.bf16.msk.msra.mxu0 %vm3666_vm5, %v3561_v18 }
 0x396   : > { %3391 = vmatprep.subr.msk.bf16.mxu0 %vm3921_vm7, %v3721_v37 }
 0x399   : > { %3394 = vmatpush3.bf16.msk.msra.mxu0 %vm3921_vm7, %v3721_v37 }
 0x39a   : > { %3396 = vmatprep.subr.bf16.mxu0 %v3805_v40 }
 0x467   : > { %v3180_v61 = vpop.f32.mrb[4].mxu0 }
 0x468   : > { %v1386_v62 = vadd.f32 %v3180_v61, %v1383_v60  ;;  %v1362_v63 = vpop.f32.mrb[5].mxu0 }
 0x469   : > { %v1385_v1 = vadd.f32 %v1378_v58, %v1362_v63 }
 0x46a   : > { %v1388_v19 = vmax.f32 %v1386_v62, 0.0 }
 0x46b   : > { %v1387_v2 = vmax.f32 %v1385_v1, 0.0  ;;  %v2343_v1 = vsub.f32 %v2245_v59, %v2245_v59 }
 0x46c   : > { %1393 = vrot.lane.b32.xlu0 %v1388_v19, %s3558_s11 }
 0x46d   : > { %1391 = vrot.lane.b32.xlu1 %v1387_v2, %s3558_s11 }
 0x4de   : > { %v1394_v6 = vpop.permute.xlu0 %1393 }
 0x4df   : > { %v1398_v7 = vmax.f32 %v1388_v19, %v1394_v6  ;;  %v1392_v9 = vpop.permute.xlu1 %1391 }
 0x4e0   : > { %v1397_v13 = vmax.f32 %v1387_v2, %v1392_v9  ;;  %v2344_v2 = vand.u32 4294901760, %v2343_v1 }
 0x4e1   : > { %v1404_v20 = vsel %vm1399_vm6, %v1398_v7, 0 }
 0x4e2   : > { %v1488_v22 = vand.u32 4294901760, %v1404_v20  ;;  %v1401_v24 = vsel %vm1399_vm6, %v1397_v13, 0  ;;  %v2345_v12 = vsub.f32 %v2343_v1, %v2344_v2  ;;  %v3471_v35 = vpack.c.bf16 %v2344_v2, %v3790_v14 }
 0x4e3   : > { %v1478_v25 = vand.u32 4294901760, %v1401_v24 }
 0x4e4   : > { %v1489_v26 = vsub.f32 %v1404_v20, %v1488_v22  ;;  %v2346_v16 = vand.u32 4294901760, %v2345_v12 }
 0x4e5   : > { %v1479_v29 = vsub.f32 %v1401_v24, %v1478_v25 }
 0x4e6   : > { %v1490_v30 = vand.u32 4294901760, %v1489_v26  ;;  %v3457_v3 = vpack.c.bf16 %v2346_v16, %v3800_v31  ;;  %v3461_v31 = vpack.c.bf16 %v2343_v1, %v3781_v8 }
 0x4e7   : > { %v1480_v32 = vand.u32 4294901760, %v1479_v29 }
 0x4e8   : > { %v1491_v33 = vsub.f32 %v1489_v26, %v1490_v30 }
 0x4e9   : > { %v1481_v38 = vsub.f32 %v1479_v29, %v1480_v32 }
 0x4ea   : > { %v1492_v39 = vand.u32 4294901760, %v1491_v33 }
 0x4eb   : > { %v1482_v34 = vand.u32 4294901760, %v1481_v38 }
 0x4ed   : > { %3189 = vmatprep.mubr.f32.mxu0 %v1482_v34 }
 0x4ee   : > { %3190 = vmatmul.mubr.f32.vlgmr.msra.gmra.mrb[6].mxu0 %v1492_v39 }
 0x4ef   : > { %3398 = vmatpush3.bf16.msra.mxu0 %v3805_v40  ;;  %3200 = vmatprep.mubr.f32.mxu0 %v1478_v25 }
 0x4f0   : > { %3400 = vmatprep.subr.bf16.mxu0 %v3399_v43 }
 0x4f3   : > { %3402 = vmatpush3.bf16.msra.mxu0 %v3399_v43 }
 0x4f4   : > { %3404 = vmatprep.subr.bf16.mxu0 %v3817_v46 }
 0x4f6   : > { %3201 = vmatmul.mubr.f32.vlgmr.msra.gmra.mrb[6].mxu0 %v1488_v22 }
 0x4f7   : > { %3406 = vmatpush3.bf16.msra.mxu0 %v3817_v46  ;;  %3211 = vmatprep.mubr.f32.mxu0 %v1479_v29 }
 0x4f8   : > { %3408 = vmatprep.subr.bf16.mxu0 %v3407_v44 }
 0x4fb   : > { %3410 = vmatpush3.bf16.msra.mxu0 %v3407_v44 }
 0x4fc   : > { %3412 = vmatprep.subr.msk.bf16.mxu0 %vm3666_vm5, %v3561_v18 }
 0x4fe   : > { %3212 = vmatmul.mubr.f32.vlgmr.msra.gmra.mrb[6].mxu0 %v1489_v26 }
 0x4ff   : > { %3414 = vmatpush3.bf16.msk.msra.mxu0 %vm3666_vm5, %v3561_v18  ;;  %3222 = vmatprep.mubr.f32.mxu0 %v1480_v32 }
 0x500   : > { %3417 = vmatprep.subr.msk.bf16.mxu0 %vm3921_vm7, %v3721_v37 }
 0x503   : > { %3420 = vmatpush3.bf16.msk.msra.mxu0 %vm3921_vm7, %v3721_v37 }
 0x504   : > { %3422 = vmatprep.subr.bf16.mxu0 %v3847_v49 }
 0x506   : > { %3223 = vmatmul.mubr.f32.vlgmr.msra.gmra.mrb[6].mxu0 %v1490_v30 }
 0x507   : > { %3424 = vmatpush3.bf16.msra.mxu0 %v3847_v49  ;;  %3233 = vmatprep.mubr.f32.mxu0 %v1478_v25 }
 0x508   : > { %3426 = vmatprep.subr.bf16.mxu0 %v3425_v11 }
 0x50b   : > { %3428 = vmatpush3.bf16.msra.mxu0 %v3425_v11 }
 0x50c   : > { %3430 = vmatprep.subr.msk.bf16.mxu0 %vm3666_vm5, %v3561_v18 }
 0x50e   : > { %3234 = vmatmul.mubr.f32.vlgmr.msra.gmra.mrb[6].mxu0 %v1488_v22 }
 0x50f   : > { %3432 = vmatpush3.bf16.msk.msra.mxu0 %vm3666_vm5, %v3561_v18  ;;  %3244 = vmatprep.mubr.f32.mxu0 %v1478_v25  ;;  %vm1955_vm5 = vcmask 130048  }
 0x510   : > { %3435 = vmatprep.subr.msk.bf16.mxu0 %vm3921_vm7, %v3721_v37 }
 0x513   : > { %3438 = vmatpush3.bf16.msk.msra.mxu0 %vm3921_vm7, %v3721_v37  ;;  %v2211_v37 = vld [vmem:[%s4040_s6 + $0x8] sm:$0xff] }
 0x516   : > { %3245 = vmatmul.mubr.f32.vlgmr.msra.gmra.mrb[6].mxu0 %v1488_v22 }
 0x517   : > { %3251 = vmatprep.mubr.msk.f32.mxu0 %vm1955_vm5, %v2877_v17 }
 0x5e9   : > { %v3246_v23 = vpop.f32.mrb[6].mxu0 }
 0x5ea   : > { %1939 = vst.msk [vmem:[#allocation3 + $0x8] sm:$0xff] %vm1937_vm1, %v3246_v23  ;;  %v1927_v40 = vpop.f32.mrb[7].mxu0 }
 0x5eb   : > { %1938 = vst.msk [vmem:[#allocation3] sm:$0xff] %vm1937_vm1, %v1927_v40 }
 0x5f1   : > { %v1943_v18 = vld [vmem:[#allocation3 + $0x8] sm:$0xff] }
 0x5f2   : > { %v1942_v41 = vld [vmem:[#allocation3] sm:$0xff] }
 0x5f3   : > { %v3542_v45 = vpack.i.bf16 %v1943_v18, %v1942_v41  ;;  %v3443_v46 = vpack.c.bf16 %v1943_v18, %v1942_v41 }
 0x5f5   : > { %3543 = vrot.lane.b32.xlu0 %v3542_v45, %s3559_s12  ;;  %3538 = vrot.lane.b32.xlu1 %v3542_v45, %s3558_s11 }
 0x5f9   : > { %2219 = vperm.xlu0 %3536, %v2211_v37   ;;  %2214 = vperm.xlu1 %3535, %v2210_v48  }
 0x667   : > { %v3539_v49 = vpop.permute.xlu1 %3538  ;;  %v3544_v21 = vpop.permute.xlu0 %3543 }
 0x668   : > { %v3541_v50 = vunpack.i.h.bf16 %v3539_v49  ;;  %v3540_v0 = vunpack.i.l.bf16 %v3539_v49  ;;  %v3546_v51 = vunpack.i.h.bf16 %v3544_v21  ;;  %v3545_v10 = vunpack.i.l.bf16 %v3544_v21 }
 0x66a   : > { %v3439_v28 = vpack.c.bf16 %v3541_v50, %v3540_v0  ;;  %v3447_v52 = vpack.c.bf16 %v3546_v51, %v3545_v10 }
 0x66c   : > { %3440 = vmatprep.subr.bf16.mxu0 %v3439_v28 }
 0x66d   : > { %3442 = vmatpush3.bf16.msra.mxu0 %v3439_v28 }
 0x66e   : > { %3444 = vmatprep.subr.bf16.mxu0 %v3443_v46 }
 0x670   : > { %3252 = vmatmul.mubr.msk.f32.vlgmr.msra.gmra.mrb[8].mxu0 %vm1955_vm5, %v2878_v42 }
 0x671   : > { %3446 = vmatpush3.bf16.msra.mxu0 %v3443_v46  ;;  %3258 = vmatprep.mubr.msk.f32.mxu0 %vm1955_vm5, %v1940_v47 }
 0x672   : > { %3448 = vmatprep.subr.bf16.mxu0 %v3447_v52 }
 0x678   : > { %3259 = vmatmul.mubr.msk.f32.vlgmr.msra.gmra.mrb[8].mxu0 %vm1955_vm5, %v1941_v53  ;;  %v2220_v57 = vpop.permute.xlu0 %2219  ;;  %v2215_v61 = vpop.permute.xlu1 %2214 }
 0x679   : > { %3450 = vmatpush3.bf16.msra.mxu0 %v3447_v52  ;;  %3265 = vmatprep.mubr.msk.f32.mxu0 %vm1955_vm5, %v2883_v54 }
 0x67a   : > { %3453 = vmatprep.subr.msk.bf16.mxu0 %vm4006_vm9, %v3451_v56 }
 0x680   : > { %3266 = vmatmul.mubr.msk.f32.vlgmr.msra.gmra.mrb[8].mxu0 %vm1955_vm5, %v2884_v55 }
 0x681   : > { %3456 = vmatpush3.bf16.msk.msra.mxu0 %vm4006_vm9, %v3451_v56 }
 0x682   : > { %3458 = vmatprep.subr.bf16.mxu0 %v3457_v3 }
 0x753   : > { %v3267_v58 = vpop.f32.mrb[8].mxu0 }
 0x754   : > { %v2223_v62 = vadd.f32 %v3267_v58, %v2220_v57  ;;  %v2199_v63 = vpop.f32.mrb[9].mxu0 }
 0x755   : > { %v2222_v36 = vadd.f32 %v2215_v61, %v2199_v63 }
 0x756   : > { %v2225_v19 = vmax.f32 %v2223_v62, 0.0 }
 0x757   : > { %v2224_v5 = vmax.f32 %v2222_v36, 0.0 }
 0x758   : > { %2230 = vrot.lane.b32.xlu0 %v2225_v19, %s3558_s11 }
 0x759   : > { %2228 = vrot.lane.b32.xlu1 %v2224_v5, %s3558_s11  ;;  %s2895_s11 = sshll.u32 %s4055_s25, 4 }
 0x75a   : > { %s275_s10 = scalar_lea.vmem %s4041_s7, %s2895_s11 }
 0x7ca   : > { %v2231_v4 = vpop.permute.xlu0 %2230 }
 0x7cb   : > { %v2235_v6 = vmax.f32 %v2225_v19, %v2231_v4  ;;  %v2229_v7 = vpop.permute.xlu1 %2228 }
 0x7cc   : > { %v2234_v9 = vmax.f32 %v2224_v5, %v2229_v7 }
 0x7cd   : > { %v2241_v13 = vsel %vm2236_vm3, %v2235_v6, 0 }
 0x7ce   : > { %v2324_v15 = vand.u32 4294901760, %v2241_v13  ;;  %v2238_v20 = vsel %vm2236_vm3, %v2234_v9, 0 }
 0x7cf   : > { %v2314_v22 = vand.u32 4294901760, %v2238_v20 }
 0x7d0   : > { %v2325_v24 = vsub.f32 %v2241_v13, %v2324_v15 }
 0x7d1   : > { %v2315_v25 = vsub.f32 %v2238_v20, %v2314_v22 }
 0x7d2   : > { %v2326_v26 = vand.u32 4294901760, %v2325_v24 }
 0x7d3   : > { %v2316_v27 = vand.u32 4294901760, %v2315_v25 }
 0x7d4   : > { %v2327_v29 = vsub.f32 %v2325_v24, %v2326_v26 }
 0x7d5   : > { %v2317_v30 = vsub.f32 %v2315_v25, %v2316_v27 }
 0x7d6   : > { %v2328_v33 = vand.u32 4294901760, %v2327_v29 }
 0x7d7   : > { %v2318_v32 = vand.u32 4294901760, %v2317_v30 }
 0x7d9   : > { %3272 = vmatprep.mubr.f32.mxu0 %v2318_v32 }
 0x7da   : > { %3273 = vmatmul.mubr.f32.vlgmr.msra.gmra.mrb[10].mxu0 %v2328_v33 }
 0x7db   : > { %3279 = vmatprep.mubr.f32.mxu0 %v2314_v22  ;;  %3460 = vmatpush3.bf16.msra.mxu0 %v3457_v3 }
 0x7dc   : > { %3462 = vmatprep.subr.bf16.mxu0 %v3461_v31 }
 0x7e2   : > { %3280 = vmatmul.mubr.f32.vlgmr.msra.gmra.mrb[10].mxu0 %v2324_v15 }
 0x7e3   : > { %3286 = vmatprep.mubr.f32.mxu0 %v2315_v25  ;;  %3464 = vmatpush3.bf16.msra.mxu0 %v3461_v31 }
 0x7e4   : > { %3467 = vmatprep.subr.msk.bf16.mxu0 %vm4006_vm9, %v3451_v56 }
 0x7ea   : > { %3287 = vmatmul.mubr.f32.vlgmr.msra.gmra.mrb[10].mxu0 %v2325_v24 }
 0x7eb   : > { %3293 = vmatprep.mubr.f32.mxu0 %v2316_v27  ;;  %3470 = vmatpush3.bf16.msk.msra.mxu0 %vm4006_vm9, %v3451_v56 }
 0x7ec   : > { %3472 = vmatprep.subr.bf16.mxu0 %v3471_v35 }
 0x7f2   : > { %3294 = vmatmul.mubr.f32.vlgmr.msra.gmra.mrb[10].mxu0 %v2326_v26 }
 0x7f3   : > { %3300 = vmatprep.mubr.f32.mxu0 %v2314_v22  ;;  %3474 = vmatpush3.bf16.msra.mxu0 %v3471_v35 }
 0x7f4   : > { %3477 = vmatprep.subr.msk.bf16.mxu0 %vm4006_vm9, %v3451_v56 }
 0x7fa   : > { %3301 = vmatmul.mubr.f32.vlgmr.msra.gmra.mrb[10].mxu0 %v2324_v15 }
 0x7fb   : > { %3307 = vmatprep.mubr.f32.mxu0 %v2314_v22  ;;  %3480 = vmatpush3.bf16.msk.msra.mxu0 %vm4006_vm9, %v3451_v56 }
 0x802   : > { %3308 = vmatmul.mubr.f32.vlgmr.msra.gmra.mrb[10].mxu0 %v2324_v15 }
 0x8d5   : > { %v3309_v8 = vpop.f32.mrb[10].mxu0 }
 0x8d6   : > { %2751 = vst.msk [vmem:[%s275_s10 + $0x8] sm:$0xff] %vm2749_vm10, %v3309_v8  ;;  %v2739_v14 = vpop.f32.mrb[11].mxu0 }
 0x8d7   : > { %2750 = vst.msk [vmem:[%s275_s10] sm:$0xff] %vm2749_vm10, %v2739_v14 }
 0x8d8 PF: > { %s17_s24 = sadd.s32 1, %s3553_s24  }
 0x8d9   : > { %p14_p4 = scmp.ge.s32.totalorder %s17_s24, 4  }
 0x8db   :  { %16 = sbr.rel (!%p14_p4) target bundleno = 1 (0x1), region = 84 }

</bundles_post_ra>
